<compile_context>
chip_gen: v7x
topology: tpu7x:2x2x1
jax: 0.10.0
libtpu: 0.0.40
codegen_flags: <defaults>
</compile_context>

<pallas_src>
import functools

import jax
import jax.numpy as jnp
from jax.experimental import pallas as pl
from jax.experimental.pallas import tpu as pltpu


def _gru_gate_kernel(x_ref, y_ref, w_ref, u_ref, ug_ref, bg_ref, o_ref):
    """One (tm, D) row tile of the GRU gate.

    w_ref : [D, 3D] = [Wr | Wz | Wg]   (fused)
    u_ref : [D, 2D] = [Ur | Uz]        (fused)
    ug_ref: [D, D]
    bg_ref: [1, D] f32
    """
    D = x_ref.shape[-1]
    x = x_ref[...]
    y = y_ref[...]
    bg = bg_ref[...].astype(jnp.float32)            # (1, D), broadcasts over rows

    # Fused MXU matmuls: storage-dtype operands, f32 accumulation.
    yW = jnp.dot(y, w_ref[...], preferred_element_type=jnp.float32)   # (tm, 3D)
    xU = jnp.dot(x, u_ref[...], preferred_element_type=jnp.float32)   # (tm, 2D)

    xf = x.astype(jnp.float32)
    r = jax.nn.sigmoid(yW[:, :D] + xU[:, :D])
    z = jax.nn.sigmoid(yW[:, D:2 * D] + xU[:, D:] - bg)

    rx = (r * xf).astype(x.dtype)                    # back to storage dtype for MXU
    h = jnp.tanh(yW[:, 2 * D:] +
                 jnp.dot(rx, ug_ref[...], preferred_element_type=jnp.float32))

    o_ref[...] = ((1.0 - z) * xf + z * h).astype(o_ref.dtype)


def _round_up(a, b):
    return (a + b - 1) // b * b


@functools.partial(jax.jit, static_argnames=("tm",))
def gru_gate(x, y, wr, ur, wz, uz, wg, ug, bg, *, tm=256):
    """x, y: [B, S, D]. wr..ug: [D, D] pre-transposed (out = act @ W). bg: [D]."""
    B, S, D = x.shape
    M = B * S
    itemsize = jnp.dtype(x.dtype).itemsize

    # Row tile: multiple of the sublane packing (8 for f32, 16 for bf16),
    # no larger than the padded row count.
    sub = max(8, 32 // itemsize)
    tm = max(sub, (int(tm) // sub) * sub)
    tm = min(tm, _round_up(M, sub))

    M_pad = _round_up(M, tm)
    x2 = x.reshape(M, D)
    y2 = y.reshape(M, D)
    if M_pad != M:
        pad = ((0, M_pad - M), (0, 0))
        x2 = jnp.pad(x2, pad)
        y2 = jnp.pad(y2, pad)

    # Fuse gate weights into wide matmuls (could also be pre-fused by caller).
    W = jnp.concatenate([wr, wz, wg], axis=1)        # [D, 3D]
    U = jnp.concatenate([ur, uz], axis=1)            # [D, 2D]
    bg2 = bg.reshape(1, D).astype(jnp.float32)

    grid = (M_pad // tm,)

    row_spec = pl.BlockSpec((tm, D), lambda i: (i, 0))
    w_spec = pl.BlockSpec((D, 3 * D), lambda i: (0, 0))
    u_spec = pl.BlockSpec((D, 2 * D), lambda i: (0, 0))
    ug_spec = pl.BlockSpec((D, D), lambda i: (0, 0))
    bg_spec = pl.BlockSpec((1, D), lambda i: (0, 0))

    # VMEM budget: weights (double-buffered by default, but constant index_map so
    # never re-DMA'd) + double-buffered row tiles for x, y, out + bias + headroom.
    vmem_bytes = int(
        2 * (6 * D * D) * itemsize         # W, U, Ug buffers
        + 2 * 3 * tm * D * itemsize        # x, y, out row tiles
        + 2 * D * 4                        # bias
        + (4 << 20))                       # headroom / internal scratch
    vmem_bytes = min(max(vmem_bytes, 16 << 20), 48 << 20)

    cost = pl.CostEstimate(
        flops=12 * M * D * D,
        transcendentals=3 * M * D,
        bytes_accessed=(3 * M * D + 6 * D * D + D) * itemsize)

    out = pl.pallas_call(
        _gru_gate_kernel,
        out_shape=jax.ShapeDtypeStruct((M_pad, D), x.dtype),
        grid_spec=pltpu.PrefetchScalarGridSpec(
            num_scalar_prefetch=0,
            grid=grid,
            in_specs=[row_spec, row_spec, w_spec, u_spec, ug_spec, bg_spec],
            out_specs=row_spec,
        ),
        compiler_params=pltpu.CompilerParams(
            dimension_semantics=("parallel",),
            vmem_limit_bytes=vmem_bytes),
        cost_estimate=cost,
    )(x2, y2, W, U, ug, bg2)

    return out[:M].reshape(B, S, D)


def _xavier_uniform(key, fan_in, fan_out, dtype=jnp.float32):
    # matches torch.nn.init.xavier_uniform_ for a [fan_out, fan_in] Linear weight
    bound = (6.0 / (fan_in + fan_out)) ** 0.5
    return jax.random.uniform(key, (fan_out, fan_in), dtype=dtype,
                              minval=-bound, maxval=bound)


def gru_gate_ref(x, y, wr, ur, wz, uz, wg, ug, bg):
    # pure-JAX reference (weights already transposed: act @ W)
    r = jax.nn.sigmoid(y @ wr + x @ ur)
    z = jax.nn.sigmoid(y @ wz + x @ uz - bg)
    h = jnp.tanh(y @ wg + (r * x) @ ug)
    return (1.0 - z) * x + z * h


if __name__ == "__main__":
    D = 128                      # input_dim
    bg_init = 0.0

    key = jax.random.PRNGKey(0)
    k_x, k_y, k_wr, k_ur, k_wz, k_uz, k_wg, k_ug = jax.random.split(key, 8)

    # torch Linear weight shape is [out, in]; kernel wants [in, out] = weight.T
    Wr = _xavier_uniform(k_wr, D, D).T
    Ur = _xavier_uniform(k_ur, D, D).T
    Wz = _xavier_uniform(k_wz, D, D).T
    Uz = _xavier_uniform(k_uz, D, D).T
    Wg = _xavier_uniform(k_wg, D, D).T
    Ug = _xavier_uniform(k_ug, D, D).T
    bg = jnp.full((D,), bg_init, dtype=jnp.float32)

    # Case 1: batch=2, seq=8 (M divisible by sublane tile).
    x1 = jax.random.normal(k_x, (2, 8, D), dtype=jnp.float32)
    y1 = jax.random.normal(k_y, (2, 8, D), dtype=jnp.float32)
    out1 = jax.block_until_ready(gru_gate(x1, y1, Wr, Ur, Wz, Uz, Wg, Ug, bg))
    ref1 = gru_gate_ref(x1, y1, Wr, Ur, Wz, Uz, Wg, Ug, bg)
    assert out1.shape == (2, 8, D)
    assert jnp.allclose(out1, ref1, atol=1e-5, rtol=1e-5), "mismatch (case 1)"

    # Case 2: batch=3, seq=5 -> M=15 (exercises the padded / ragged-M path).
    x2 = jax.random.normal(jax.random.fold_in(k_x, 1), (3, 5, D), dtype=jnp.float32)
    y2 = jax.random.normal(jax.random.fold_in(k_y, 1), (3, 5, D), dtype=jnp.float32)
    out2 = jax.block_until_ready(gru_gate(x2, y2, Wr, Ur, Wz, Uz, Wg, Ug, bg))
    ref2 = gru_gate_ref(x2, y2, Wr, Ur, Wz, Uz, Wg, Ug, bg)
    assert out2.shape == (3, 5, D)
    assert jnp.allclose(out2, ref2, atol=1e-5, rtol=1e-5), "mismatch (case 2)"

    print("KERNEL_OK")
</pallas_src>

<mosaic_0001>
module attributes {stable_mosaic.version = 11 : i64} {
  func.func @_gru_gate_kernel(%arg0: i32, %arg1: memref<16x128xf32, #tpu.memory_space<vmem>>, %arg2: memref<16x128xf32, #tpu.memory_space<vmem>>, %arg3: memref<128x384xf32, #tpu.memory_space<vmem>>, %arg4: memref<128x256xf32, #tpu.memory_space<vmem>>, %arg5: memref<128x128xf32, #tpu.memory_space<vmem>>, %arg6: memref<1x128xf32, #tpu.memory_space<vmem>>, %arg7: memref<16x128xf32, #tpu.memory_space<vmem>>) attributes {dimension_semantics = [#tpu.dimension_semantics<parallel>], iteration_bounds = array<i64: 1>, scalar_prefetch = 0 : i64, scratch_operands = 0 : i64, tpu.core_type = #tpu.core_type<tc>, window_params = [{transform_indices = @transform_0, window_bounds = array<i64: 16, 128>}, {transform_indices = @transform_1, window_bounds = array<i64: 16, 128>}, {pipeline_mode = #tpu.pipeline_mode<synchronous>, transform_indices = @transform_2, window_bounds = array<i64: 128, 384>}, {pipeline_mode = #tpu.pipeline_mode<synchronous>, transform_indices = @transform_3, window_bounds = array<i64: 128, 256>}, {pipeline_mode = #tpu.pipeline_mode<synchronous>, transform_indices = @transform_4, window_bounds = array<i64: 128, 128>}, {pipeline_mode = #tpu.pipeline_mode<synchronous>, transform_indices = @transform_5, window_bounds = array<i64: 1, 128>}, {transform_indices = @transform_6, window_bounds = array<i64: 16, 128>}]} {
    %c0 = arith.constant 0 : index
    %c0_0 = arith.constant 0 : index
    %0 = vector.load %arg1[%c0, %c0_0] : memref<16x128xf32, #tpu.memory_space<vmem>>, vector<16x128xf32>
    %c0_1 = arith.constant 0 : index
    %c0_2 = arith.constant 0 : index
    %1 = vector.load %arg2[%c0_1, %c0_2] : memref<16x128xf32, #tpu.memory_space<vmem>>, vector<16x128xf32>
    %c0_3 = arith.constant 0 : index
    %c0_4 = arith.constant 0 : index
    %2 = vector.load %arg6[%c0_3, %c0_4] : memref<1x128xf32, #tpu.memory_space<vmem>>, vector<1x128xf32>
    %c0_5 = arith.constant 0 : index
    %c0_6 = arith.constant 0 : index
    %3 = vector.load %arg3[%c0_5, %c0_6] : memref<128x384xf32, #tpu.memory_space<vmem>>, vector<128x384xf32>
    %cst = arith.constant dense<0.000000e+00> : vector<16x384xf32>
    %4 = tpu.matmul %1, %3, %cst {dimension_numbers = #tpu.dot_dimension_numbers<[1], [0], [0], [1], [0, 0, 1, 1], [], []>} : vector<16x128xf32>, vector<128x384xf32>, vector<16x384xf32> -> vector<16x384xf32>
    %c0_7 = arith.constant 0 : index
    %c0_8 = arith.constant 0 : index
    %5 = vector.load %arg4[%c0_7, %c0_8] : memref<128x256xf32, #tpu.memory_space<vmem>>, vector<128x256xf32>
    %cst_9 = arith.constant dense<0.000000e+00> : vector<16x256xf32>
    %6 = tpu.matmul %0, %5, %cst_9 {dimension_numbers = #tpu.dot_dimension_numbers<[1], [0], [0], [1], [0, 0, 1, 1], [], []>} : vector<16x128xf32>, vector<128x256xf32>, vector<16x256xf32> -> vector<16x256xf32>
    %7 = vector.extract_strided_slice %4 {offsets = [0, 0], sizes = [16, 128], strides = [1, 1]} : vector<16x384xf32> to vector<16x128xf32>
    %8 = vector.extract_strided_slice %6 {offsets = [0, 0], sizes = [16, 128], strides = [1, 1]} : vector<16x256xf32> to vector<16x128xf32>
    %9 = arith.addf %7, %8 : vector<16x128xf32>
    %10 = arith.negf %9 : vector<16x128xf32>
    %11 = math.exp %10 : vector<16x128xf32>
    %cst_10 = arith.constant 1.000000e+00 : f32
    %12 = vector.broadcast %cst_10 : f32 to vector<16x128xf32>
    %13 = arith.addf %12, %11 : vector<16x128xf32>
    %14 = arith.divf %12, %13 : vector<16x128xf32>
    %15 = vector.extract_strided_slice %4 {offsets = [0, 128], sizes = [16, 128], strides = [1, 1]} : vector<16x384xf32> to vector<16x128xf32>
    %16 = vector.extract_strided_slice %6 {offsets = [0, 128], sizes = [16, 128], strides = [1, 1]} : vector<16x256xf32> to vector<16x128xf32>
    %17 = arith.addf %15, %16 : vector<16x128xf32>
    %18 = vector.broadcast %2 : vector<1x128xf32> to vector<16x128xf32>
    %19 = arith.subf %17, %18 : vector<16x128xf32>
    %20 = arith.negf %19 : vector<16x128xf32>
    %21 = math.exp %20 : vector<16x128xf32>
    %cst_11 = arith.constant 1.000000e+00 : f32
    %22 = vector.broadcast %cst_11 : f32 to vector<16x128xf32>
    %23 = arith.addf %22, %21 : vector<16x128xf32>
    %24 = arith.divf %22, %23 : vector<16x128xf32>
    %25 = arith.mulf %14, %0 : vector<16x128xf32>
    %26 = vector.extract_strided_slice %4 {offsets = [0, 256], sizes = [16, 128], strides = [1, 1]} : vector<16x384xf32> to vector<16x128xf32>
    %c0_12 = arith.constant 0 : index
    %c0_13 = arith.constant 0 : index
    %27 = vector.load %arg5[%c0_12, %c0_13] : memref<128x128xf32, #tpu.memory_space<vmem>>, vector<128x128xf32>
    %cst_14 = arith.constant dense<0.000000e+00> : vector<16x128xf32>
    %28 = tpu.matmul %25, %27, %cst_14 {dimension_numbers = #tpu.dot_dimension_numbers<[1], [0], [0], [1], [0, 0, 1, 1], [], []>} : vector<16x128xf32>, vector<128x128xf32>, vector<16x128xf32> -> vector<16x128xf32>
    %29 = arith.addf %26, %28 : vector<16x128xf32>
    %30 = math.tanh %29 : vector<16x128xf32>
    %cst_15 = arith.constant 1.000000e+00 : f32
    %31 = vector.broadcast %cst_15 : f32 to vector<16x128xf32>
    %32 = arith.subf %31, %24 : vector<16x128xf32>
    %33 = arith.mulf %32, %0 : vector<16x128xf32>
    %34 = arith.mulf %24, %30 : vector<16x128xf32>
    %35 = arith.addf %33, %34 : vector<16x128xf32>
    %c0_16 = arith.constant 0 : index
    %c0_17 = arith.constant 0 : index
    %36 = vector.load %arg7[%c0_16, %c0_17] : memref<16x128xf32, #tpu.memory_space<vmem>>, vector<16x128xf32>
    tpu.vector_store %arg7[%c0_16, %c0_17], %35 {strides = array<i32>} : memref<16x128xf32, #tpu.memory_space<vmem>>, vector<16x128xf32>,
    return
  }
  func.func @transform_0(%arg0: i32) -> (i32, i32) {
    %c0_i32 = arith.constant 0 : i32
    %c0_i32_0 = arith.constant 0 : i32
    return %arg0, %c0_i32 : i32, i32
  }
  func.func @transform_1(%arg0: i32) -> (i32, i32) {
    %c0_i32 = arith.constant 0 : i32
    %c0_i32_0 = arith.constant 0 : i32
    return %arg0, %c0_i32 : i32, i32
  }
  func.func @transform_2(%arg0: i32) -> (i32, i32) {
    %c0_i32 = arith.constant 0 : i32
    %c0_i32_0 = arith.constant 0 : i32
    %c0_i32_1 = arith.constant 0 : i32
    return %c0_i32, %c0_i32_0 : i32, i32
  }
  func.func @transform_3(%arg0: i32) -> (i32, i32) {
    %c0_i32 = arith.constant 0 : i32
    %c0_i32_0 = arith.constant 0 : i32
    %c0_i32_1 = arith.constant 0 : i32
    return %c0_i32, %c0_i32_0 : i32, i32
  }
  func.func @transform_4(%arg0: i32) -> (i32, i32) {
    %c0_i32 = arith.constant 0 : i32
    %c0_i32_0 = arith.constant 0 : i32
    %c0_i32_1 = arith.constant 0 : i32
    return %c0_i32, %c0_i32_0 : i32, i32
  }
  func.func @transform_5(%arg0: i32) -> (i32, i32) {
    %c0_i32 = arith.constant 0 : i32
    %c0_i32_0 = arith.constant 0 : i32
    %c0_i32_1 = arith.constant 0 : i32
    return %c0_i32, %c0_i32_0 : i32, i32
  }
  func.func @transform_6(%arg0: i32) -> (i32, i32) {
    %c0_i32 = arith.constant 0 : i32
    %c0_i32_0 = arith.constant 0 : i32
    return %arg0, %c0_i32 : i32, i32
  }
}

</mosaic_0001>

<bundles_post_ra>
// kernel: gru_gate.1
= control target key start
LH: loop header
LB: loop body
LE: loop exit
PB: predicated region body
PF: predicated region fallthrough
CT: control target
= control target key end

     0   :  { %v790_v7 = vmov 0.0   ;;  %s1166_s0 = inlined_call_operand.vmem [shape: f32[16,128], index: 0, kind: input, shape index: {}]   ;;  %s1167_s1 = inlined_call_operand.vmem [shape: f32[16,128], index: 1, kind: input, shape index: {}]   ;;  %s1168_s2 = inlined_call_operand.vmem [shape: f32[128,384], index: 2, kind: input, shape index: {}]   ;;  %s1169_s3 = inlined_call_operand.vmem [shape: f32[128,256], index: 3, kind: input, shape index: {}]   ;;  %s1170_s4 = inlined_call_operand.vmem [shape: f32[128,128], index: 4, kind: input, shape index: {}]   ;;  %s1171_s5 = inlined_call_operand.vmem [shape: f32[1,128], index: 5, kind: input, shape index: {}]   ;;  %s1172_s6 = inlined_call_operand.hbm [shape: f32[16,128], index: 6, kind: output, shape index: {}]  }
   0x1   :  { %v30_v0 = vld [vmem:[%s1168_s2 + $0x8] sm:$0xff]  ;;  %v33_v1 = vld [vmem:[%s1168_s2 + $0x20] sm:$0xff]  ;;  %v32_v4 = vld [vmem:[%s1168_s2 + $0x18] sm:$0xff]  ;;  %141 = vmatprep.mubr.f32.mxu0 %v790_v7 }
   0x2   :  { %v29_v2 = vld [vmem:[%s1168_s2] sm:$0xff]  ;;  %v608_v3 = vpack.c.bf16 %v33_v1, %v30_v0  ;;  %v36_v5 = vld [vmem:[%s1168_s2 + $0x38] sm:$0xff]  ;;  %v39_v6 = vld [vmem:[%s1168_s2 + $0x50] sm:$0xff] }
   0x3   :  { %v610_v8 = vpack.c.bf16 %v32_v4, %v29_v2  ;;  %v612_v9 = vpack.c.bf16 %v39_v6, %v36_v5  ;;  %v35_v10 = vld [vmem:[%s1168_s2 + $0x30] sm:$0xff]  ;;  %v38_v11 = vld [vmem:[%s1168_s2 + $0x48] sm:$0xff]  ;;  %v45_v13 = vld [vmem:[%s1168_s2 + $0x80] sm:$0xff] }
   0x4   :  { %v42_v12 = vld [vmem:[%s1168_s2 + $0x68] sm:$0xff]  ;;  %609 = vmatprep.subr.bf16.mxu0 %v608_v3  ;;  %v614_v14 = vpack.c.bf16 %v38_v11, %v35_v10  ;;  %v41_v16 = vld [vmem:[%s1168_s2 + $0x60] sm:$0xff]  ;;  %v44_v17 = vld [vmem:[%s1168_s2 + $0x78] sm:$0xff] }
   0x5   :  { %611 = vmatpush1.bf16.msra.mxu0 %v610_v8  ;;  %v616_v15 = vpack.c.bf16 %v45_v13, %v42_v12  ;;  %v48_v18 = vld [vmem:[%s1168_s2 + $0x98] sm:$0xff]  ;;  %v51_v19 = vld [vmem:[%s1168_s2 + $0xb0] sm:$0xff]  ;;  %v618_v20 = vpack.c.bf16 %v44_v17, %v41_v16  ;;  %v50_v23 = vld [vmem:[%s1168_s2 + $0xa8] sm:$0xff] }
   0x6   :  { %613 = vmatprep.subr.bf16.mxu0 %v612_v9  ;;  %v620_v21 = vpack.c.bf16 %v51_v19, %v48_v18  ;;  %v47_v22 = vld [vmem:[%s1168_s2 + $0x90] sm:$0xff]  ;;  %v54_v24 = vld [vmem:[%s1168_s2 + $0xc8] sm:$0xff]  ;;  %v57_v25 = vld [vmem:[%s1168_s2 + $0xe0] sm:$0xff] }
   0x7   :  { %v887_v26 = vld [vmem:[%s1167_s1] sm:$0xff]  ;;  %v622_v27 = vpack.c.bf16 %v50_v23, %v47_v22  ;;  %v624_v28 = vpack.c.bf16 %v57_v25, %v54_v24  ;;  %v56_v30 = vld [vmem:[%s1168_s2 + $0xd8] sm:$0xff]  ;;  %v63_v32 = vld [vmem:[%s1168_s2 + $0x110] sm:$0xff] }
   0x8   :  { %570 = vmatprep.mubr.f32.mxu1 %v887_v26  ;;  %v53_v29 = vld [vmem:[%s1168_s2 + $0xc0] sm:$0xff]  ;;  %v60_v31 = vld [vmem:[%s1168_s2 + $0xf8] sm:$0xff]  ;;  %v59_v35 = vld [vmem:[%s1168_s2 + $0xf0] sm:$0xff] }
   0x9   :  { %615 = vmatpush1.bf16.msra.mxu0 %v614_v14  ;;  %v626_v33 = vpack.c.bf16 %v56_v30, %v53_v29  ;;  %v628_v34 = vpack.c.bf16 %v63_v32, %v60_v31  ;;  %v62_v36 = vld [vmem:[%s1168_s2 + $0x108] sm:$0xff]  ;;  %v69_v38 = vld [vmem:[%s1168_s2 + $0x140] sm:$0xff]  ;;  %v68_v42 = vld [vmem:[%s1168_s2 + $0x138] sm:$0xff] }
   0xa   :  { %617 = vmatprep.subr.bf16.mxu0 %v616_v15  ;;  %v66_v37 = vld [vmem:[%s1168_s2 + $0x128] sm:$0xff]  ;;  %v630_v39 = vpack.c.bf16 %v62_v36, %v59_v35  ;;  %v65_v41 = vld [vmem:[%s1168_s2 + $0x120] sm:$0xff]  ;;  %v72_v43 = vld [vmem:[%s1168_s2 + $0x158] sm:$0xff] }
   0xb   :  { %v632_v40 = vpack.c.bf16 %v69_v38, %v66_v37  ;;  %v75_v44 = vld [vmem:[%s1168_s2 + $0x170] sm:$0xff]  ;;  %v34_v46 = vld [vmem:[%s1168_s2 + $0x28] sm:$0xff]  ;;  %v37_v47 = vld [vmem:[%s1168_s2 + $0x40] sm:$0xff]  ;;  %v634_v49 = vpack.c.bf16 %v68_v42, %v65_v41 }
   0xc   :  { %v31_v45 = vld [vmem:[%s1168_s2 + $0x10] sm:$0xff]  ;;  %v40_v48 = vld [vmem:[%s1168_s2 + $0x58] sm:$0xff]  ;;  %v636_v53 = vpack.c.bf16 %v75_v44, %v72_v43  ;;  %v74_v54 = vld [vmem:[%s1168_s2 + $0x168] sm:$0xff] }
   0xd   :  { %619 = vmatpush1.bf16.msra.mxu0 %v618_v20  ;;  %v71_v50 = vld [vmem:[%s1168_s2 + $0x150] sm:$0xff]  ;;  %v640_v51 = vpack.c.bf16 %v34_v46, %v31_v45  ;;  %v644_v52 = vpack.c.bf16 %v40_v48, %v37_v47  ;;  %v46_v56 = vld [vmem:[%s1168_s2 + $0x88] sm:$0xff]  ;;  %v232_v58 = vld [vmem:[%s1169_s3 + $0x18] sm:$0xff] }
   0xe   :  { %621 = vmatprep.subr.bf16.mxu0 %v620_v21  ;;  %v43_v55 = vld [vmem:[%s1168_s2 + $0x70] sm:$0xff]  ;;  %v230_v57 = vld [vmem:[%s1169_s3 + $0x8] sm:$0xff]  ;;  %v638_v59 = vpack.c.bf16 %v74_v54, %v71_v50 }
   0xf   :  { %641 = vmatprep.subr.bf16.mxu1 %v640_v51  ;;  %v648_v60 = vpack.c.bf16 %v46_v56, %v43_v55 }
  0x10   :  { %643 = vmatpush3.bf16.msra.mxu1 %v640_v51 }
  0x11   :  { %623 = vmatpush1.bf16.msra.mxu0 %v622_v27  ;;  %645 = vmatprep.subr.bf16.mxu1 %v644_v52 }
  0x12   :  { %625 = vmatprep.subr.bf16.mxu0 %v624_v28 }
  0x15   :  { %627 = vmatpush1.bf16.msra.mxu0 %v626_v33 }
  0x16   :  { %629 = vmatprep.subr.bf16.mxu0 %v628_v34 }
  0x19   :  { %631 = vmatpush1.bf16.msra.mxu0 %v630_v39 }
  0x1a   :  { %633 = vmatprep.subr.bf16.mxu0 %v632_v40 }
  0x1d   :  { %635 = vmatpush1.bf16.msra.mxu0 %v634_v49 }
  0x1e   :  { %11 = vsyncpa [#allocation3], 0  ;;  %637 = vmatprep.subr.bf16.mxu0 %v636_v53  ;;  %v672_v61 = vpack.c.bf16 %v232_v58, %v230_v57  ;;  %v229_v62 = vld [vmem:[%s1169_s3] sm:$0xff]  ;;  %v231_v63 = vld [vmem:[%s1169_s3 + $0x10] sm:$0xff]  ;;  %647 = vmatpush3.bf16.msra.mxu1 %v644_v52 }
  0x1f   :  { %v234_v0 = vld [vmem:[%s1169_s3 + $0x28] sm:$0xff]  ;;  %v236_v1 = vld [vmem:[%s1169_s3 + $0x38] sm:$0xff]  ;;  %v49_v2 = vld [vmem:[%s1168_s2 + $0xa0] sm:$0xff]  ;;  %v674_v4 = vpack.c.bf16 %v231_v63, %v229_v62  ;;  %649 = vmatprep.subr.bf16.mxu1 %v648_v60 }
  0x20   :  { %v52_v3 = vld [vmem:[%s1168_s2 + $0xb8] sm:$0xff]  ;;  %v676_v5 = vpack.c.bf16 %v236_v1, %v234_v0  ;;  %v233_v6 = vld [vmem:[%s1169_s3 + $0x20] sm:$0xff]  ;;  %v235_v8 = vld [vmem:[%s1169_s3 + $0x30] sm:$0xff] }
  0x21   :  { %639 = vmatpush1.bf16.msra.mxu0 %v638_v59  ;;  %v238_v9 = vld [vmem:[%s1169_s3 + $0x48] sm:$0xff]  ;;  %v652_v10 = vpack.c.bf16 %v52_v3, %v49_v2  ;;  %v240_v11 = vld [vmem:[%s1169_s3 + $0x58] sm:$0xff]  ;;  %v55_v12 = vld [vmem:[%s1168_s2 + $0xd0] sm:$0xff]  ;;  %v678_v14 = vpack.c.bf16 %v235_v8, %v233_v6 }
  0x22   :  { %673 = vmatprep.subr.bf16.mxu0 %v672_v61  ;;  %v58_v13 = vld [vmem:[%s1168_s2 + $0xe8] sm:$0xff]  ;;  %651 = vmatpush3.bf16.msra.mxu1 %v648_v60  ;;  %v237_v15 = vld [vmem:[%s1169_s3 + $0x40] sm:$0xff]  ;;  %v680_v17 = vpack.c.bf16 %v240_v11, %v238_v9  ;;  %v239_v18 = vld [vmem:[%s1169_s3 + $0x50] sm:$0xff] }
  0x23   :  { %v1000_v16 = vld [vmem:[%s1167_s1 + $0x8] sm:$0xff]  ;;  %653 = vmatprep.subr.bf16.mxu1 %v652_v10  ;;  %v656_v19 = vpack.c.bf16 %v58_v13, %v55_v12  ;;  %v61_v20 = vld [vmem:[%s1168_s2 + $0x100] sm:$0xff]  ;;  %v64_v21 = vld [vmem:[%s1168_s2 + $0x118] sm:$0xff]  ;;  %v682_v24 = vpack.c.bf16 %v239_v18, %v237_v15 }
  0x24   :  { %142 = vmatmul.mubr.f32.vlgmr.msra.gmra.mrb[0].mxu0 %v887_v26  ;;  %v242_v22 = vld [vmem:[%s1169_s3 + $0x68] sm:$0xff]  ;;  %v244_v23 = vld [vmem:[%s1169_s3 + $0x78] sm:$0xff]  ;;  %v241_v25 = vld [vmem:[%s1169_s3 + $0x60] sm:$0xff]  ;;  %v660_v26 = vpack.c.bf16 %v64_v21, %v61_v20 }
  0x25   :  { %675 = vmatpush1.bf16.msra.mxu0 %v674_v4  ;;  %147 = vmatprep.mubr.f32.mxu0 %v790_v7  ;;  %v684_v27 = vpack.c.bf16 %v244_v23, %v242_v22  ;;  %v243_v28 = vld [vmem:[%s1169_s3 + $0x70] sm:$0xff]  ;;  %v70_v30 = vld [vmem:[%s1168_s2 + $0x148] sm:$0xff]  ;;  %v248_v32 = vld [vmem:[%s1169_s3 + $0x98] sm:$0xff] }
  0x26   :  { %677 = vmatprep.subr.bf16.mxu0 %v676_v5  ;;  %655 = vmatpush3.bf16.msra.mxu1 %v652_v10  ;;  %v67_v29 = vld [vmem:[%s1168_s2 + $0x130] sm:$0xff]  ;;  %v246_v31 = vld [vmem:[%s1169_s3 + $0x88] sm:$0xff]  ;;  %v686_v33 = vpack.c.bf16 %v243_v28, %v241_v25  ;;  %v245_v34 = vld [vmem:[%s1169_s3 + $0x80] sm:$0xff] }
  0x27   :  { %657 = vmatprep.subr.bf16.mxu1 %v656_v19  ;;  %v664_v35 = vpack.c.bf16 %v70_v30, %v67_v29  ;;  %v688_v36 = vpack.c.bf16 %v248_v32, %v246_v31  ;;  %v247_v37 = vld [vmem:[%s1169_s3 + $0x90] sm:$0xff]  ;;  %v73_v38 = vld [vmem:[%s1168_s2 + $0x160] sm:$0xff]  ;;  %v76_v39 = vld [vmem:[%s1168_s2 + $0x178] sm:$0xff] }
  0x28   :  { %148 = vmatmul.mubr.f32.gmra.mrb[2].mxu0 %v1000_v16  ;;  %v250_v40 = vld [vmem:[%s1169_s3 + $0xa8] sm:$0xff]  ;;  %v252_v41 = vld [vmem:[%s1169_s3 + $0xb8] sm:$0xff]  ;;  %v690_v42 = vpack.c.bf16 %v247_v37, %v245_v34  ;;  %v668_v43 = vpack.c.bf16 %v76_v39, %v73_v38  ;;  %v249_v45 = vld [vmem:[%s1169_s3 + $0xa0] sm:$0xff] }
  0x29   :  { %679 = vmatpush1.bf16.msra.mxu0 %v678_v14  ;;  %325 = vmatprep.mubr.f32.mxu0 %v790_v7  ;;  %v692_v44 = vpack.c.bf16 %v252_v41, %v250_v40  ;;  %v251_v46 = vld [vmem:[%s1169_s3 + $0xb0] sm:$0xff]  ;;  %v254_v47 = vld [vmem:[%s1169_s3 + $0xc8] sm:$0xff]  ;;  %v256_v48 = vld [vmem:[%s1169_s3 + $0xd8] sm:$0xff] }
  0x2a   :  { %681 = vmatprep.subr.bf16.mxu0 %v680_v17  ;;  %659 = vmatpush3.bf16.msra.mxu1 %v656_v19  ;;  %v694_v49 = vpack.c.bf16 %v251_v46, %v249_v45  ;;  %v696_v50 = vpack.c.bf16 %v256_v48, %v254_v47  ;;  %v253_v51 = vld [vmem:[%s1169_s3 + $0xc0] sm:$0xff]  ;;  %v255_v52 = vld [vmem:[%s1169_s3 + $0xd0] sm:$0xff]  ;;  %v258_v53 = vld [vmem:[%s1169_s3 + $0xe8] sm:$0xff] }
  0x2b   :  { %661 = vmatprep.subr.bf16.mxu1 %v660_v26  ;;  %v260_v54 = vld [vmem:[%s1169_s3 + $0xf8] sm:$0xff]  ;;  %v698_v55 = vpack.c.bf16 %v255_v52, %v253_v51  ;;  %v257_v57 = vld [vmem:[%s1169_s3 + $0xe0] sm:$0xff]  ;;  %v259_v58 = vld [vmem:[%s1169_s3 + $0xf0] sm:$0xff] }
  0x2c   :  { %v700_v56 = vpack.c.bf16 %v260_v54, %v258_v53  ;;  %v702_v59 = vpack.c.bf16 %v259_v58, %v257_v57  ;;  %v1089_v60 = vld [vmem:[%s1166_s0] sm:$0xff]  ;;  %v1096_v61 = vld [vmem:[%s1166_s0 + $0x8] sm:$0xff]  ;;  %v379_v1 = vld [vmem:[%s1170_s4 + $0x18] sm:$0xff] }
  0x2d   :  { %683 = vmatpush1.bf16.msra.mxu0 %v682_v24  ;;  %v376_v62 = vld [vmem:[%s1170_s4] sm:$0xff]  ;;  %v377_v63 = vld [vmem:[%s1170_s4 + $0x8] sm:$0xff]  ;;  %v382_v6 = vld [vmem:[%s1170_s4 + $0x30] sm:$0xff] }
  0x2e   :  { %685 = vmatprep.subr.bf16.mxu0 %v684_v27  ;;  %663 = vmatpush3.bf16.msra.mxu1 %v660_v26  ;;  %v704_v0 = vpack.c.bf16 %v377_v63, %v376_v62  ;;  %v380_v3 = vld [vmem:[%s1170_s4 + $0x20] sm:$0xff]  ;;  %v381_v4 = vld [vmem:[%s1170_s4 + $0x28] sm:$0xff]  ;;  %v383_v8 = vld [vmem:[%s1170_s4 + $0x38] sm:$0xff] }
  0x2f   :  { %665 = vmatprep.subr.bf16.mxu1 %v664_v35  ;;  %v712_v5 = vpack.c.bf16 %v381_v4, %v380_v3  ;;  %v716_v9 = vpack.c.bf16 %v383_v8, %v382_v6  ;;  %v384_v10 = vld [vmem:[%s1170_s4 + $0x40] sm:$0xff]  ;;  %v385_v11 = vld [vmem:[%s1170_s4 + $0x48] sm:$0xff]  ;;  %v386_v13 = vld [vmem:[%s1170_s4 + $0x50] sm:$0xff] }
  0x30   :  { %v720_v12 = vpack.c.bf16 %v385_v11, %v384_v10  ;;  %v387_v14 = vld [vmem:[%s1170_s4 + $0x58] sm:$0xff]  ;;  %v389_v17 = vld [vmem:[%s1170_s4 + $0x68] sm:$0xff]  ;;  %v390_v19 = vld [vmem:[%s1170_s4 + $0x70] sm:$0xff] }
  0x31   :  { %687 = vmatpush1.bf16.msra.mxu0 %v686_v33  ;;  %v724_v15 = vpack.c.bf16 %v387_v14, %v386_v13  ;;  %v391_v20 = vld [vmem:[%s1170_s4 + $0x78] sm:$0xff] }
  0x32   :  { %689 = vmatprep.subr.bf16.mxu0 %v688_v36  ;;  %667 = vmatpush3.bf16.msra.mxu1 %v664_v35  ;;  %v732_v21 = vpack.c.bf16 %v391_v20, %v390_v19  ;;  %v499_v36 = vld [vmem:[%s1171_s5] ss:$0 sm:$0xff]  ;;  %s791_s5 = smov [#allocation2]  }
  0x33   :  { %669 = vmatprep.subr.bf16.mxu1 %v668_v43  ;;  %s486_s2 = sshll.u32 %s791_s5, 4  ;;  %s487_s2 = int_to_ptr.vmem [resolvable:$true] %s486_s2 }
  0x34   :  { %s766_s21 = scalar_lea.vmem %s487_s2, 256  ;;  %p771_p1 = scmp.lt.s32.totalorder %s487_s2, %s487_s2 }
  0x35   :  { %691 = vmatpush1.bf16.msra.mxu0 %v690_v42  ;;  %p767_p0 = scmp.ne.s32.totalorder %s487_s2, %s766_s21  ;;  %p772_p2 = scmp.lt.s32.totalorder %s766_s21, %s766_s21 }
  0x36   :  { %693 = vmatprep.subr.bf16.mxu0 %v692_v44  ;;  %671 = vmatpush3.bf16.msra.mxu1 %v668_v43 }
  0x37   :  { %705 = vmatprep.subr.bf16.mxu1 %v704_v0  ;;  %p773_p3 = por %p772_p2, %p771_p1 }
  0x39   :  { %695 = vmatpush1.bf16.msra.mxu0 %v694_v49  ;;  %571 = vmatmul.mubr.f32.vlgmr.msra.gmra.mrb[0].mxu1 %v1000_v16  ;;  %v388_v16 = vld [vmem:[%s1170_s4 + $0x60] sm:$0xff]  ;;  %p774_p4 = pnand %p773_p3, %p767_p0 }
  0x3a   :  { %697 = vmatprep.subr.bf16.mxu0 %v696_v50  ;;  %707 = vmatpush3.bf16.msra.mxu1 %v704_v0  ;;  %v728_v18 = vpack.c.bf16 %v389_v17, %v388_v16 }
  0x3d   :  { %699 = vmatpush1.bf16.msra.mxu0 %v698_v55 }
  0x3e   :  { %701 = vmatprep.subr.bf16.mxu0 %v700_v56 }
  0x41   :  { %703 = vmatpush1.bf16.msra.mxu0 %v702_v59 }
  0x44   :  { %326 = vmatmul.mubr.f32.vlgmr.msra.gmra.mrb[0].mxu0 %v1089_v60 }
  0x45   :  { %331 = vmatprep.mubr.f32.mxu0 %v790_v7  ;;  %v378_v7 = vld [vmem:[%s1170_s4 + $0x10] sm:$0xff] }
  0x46   :  { %v708_v2 = vpack.c.bf16 %v379_v1, %v378_v7 }
  0x48   :  { %332 = vmatmul.mubr.f32.gmra.mrb[2].mxu0 %v1096_v61  ;;  %709 = vmatprep.subr.bf16.mxu1 %v708_v2 }
  0x49   :  { %711 = vmatpush3.bf16.msra.mxu1 %v708_v2 }
  0x4a   :  { %713 = vmatprep.subr.bf16.mxu1 %v712_v5 }
  0x4d   :  { %715 = vmatpush3.bf16.msra.mxu1 %v712_v5 }
  0x4e   :  { %717 = vmatprep.subr.bf16.mxu1 %v716_v9 }
  0x51   :  { %719 = vmatpush3.bf16.msra.mxu1 %v716_v9 }
  0x52   :  { %721 = vmatprep.subr.bf16.mxu1 %v720_v12 }
  0x55   :  { %723 = vmatpush3.bf16.msra.mxu1 %v720_v12 }
  0x56   :  { %725 = vmatprep.subr.bf16.mxu1 %v724_v15 }
  0x59   :  { %727 = vmatpush3.bf16.msra.mxu1 %v724_v15 }
  0x5a   :  { %729 = vmatprep.subr.bf16.mxu1 %v728_v18 }
  0x5d   :  { %731 = vmatpush3.bf16.msra.mxu1 %v728_v18 }
  0x5e   :  { %733 = vmatprep.subr.bf16.mxu1 %v732_v21 }
  0x61   :  { %735 = vmatpush3.bf16.msra.mxu1 %v732_v21 }
 0x117   :  { %v327_v22 = vpop.f32.mrb[0].mxu0 }
 0x118   :  { %v497_v23 = vmul.f32 -1.442695, %v327_v22  ;;  %v329_v24 = vpop.f32.mrb[1].mxu0 }
 0x119   :  { %v360_v38 = vsub.f32 %v329_v24, %v499_v36 }
 0x11a   :  { %746 = vpow2.f32 %v497_v23 }
 0x11b   :  { %v333_v25 = vpop.f32.mrb[2].mxu0  ;;  %v500_v40 = vmul.f32 -1.442695, %v360_v38 }
 0x11c   :  { %v498_v26 = vmul.f32 -1.442695, %v333_v25  ;;  %v335_v27 = vpop.f32.mrb[3].mxu0 }
 0x11d   :  { %v361_v37 = vsub.f32 %v335_v27, %v499_v36 }
 0x11e   :  { %748 = vpow2.f32 %v498_v26 }
 0x11f   :  { %v501_v39 = vmul.f32 -1.442695, %v361_v37 }
 0x124   :  { %v747_v28 = vpop.eup %746 }
 0x125   :  { %v346_v29 = vadd.f32 1.0, %v747_v28 }
 0x127   :  { %750 = vrcp.f32 %v346_v29 }
 0x128   :  { %v749_v30 = vpop.eup %748 }
 0x129   :  { %v347_v31 = vadd.f32 1.0, %v749_v30 }
 0x12b   :  { %752 = vrcp.f32 %v347_v31 }
 0x12c   :  { %754 = vpow2.f32 %v501_v39 }
 0x12d   :  { %756 = vpow2.f32 %v500_v40 }
 0x131   :  { %v751_v32 = vpop.eup %750 }
 0x132   :  { %v374_v33 = vmul.f32 %v751_v32, %v1089_v60 }
 0x134   :  { %605 = vmatprep.mubr.f32.mxu1 %v374_v33 }
 0x135   :  { %v753_v34 = vpop.eup %752 }
 0x136   :  { %v375_v35 = vmul.f32 %v753_v34, %v1096_v61  ;;  %v755_v41 = vpop.eup %754 }
 0x137   :  { %v757_v42 = vpop.eup %756  ;;  %v369_v43 = vadd.f32 1.0, %v755_v41 }
 0x138   :  { %606 = vmatmul.mubr.f32.vlgmr.msra.gmra.mrb[0].mxu1 %v375_v35  ;;  %v368_v44 = vadd.f32 1.0, %v757_v42 }
 0x139   :  { %758 = vrcp.f32 %v369_v43 }
 0x13a   :  { %760 = vrcp.f32 %v368_v44 }
 0x143   :  { %v759_v47 = vpop.eup %758 }
 0x144   :  { %v761_v48 = vpop.eup %760  ;;  %v472_v49 = vsub.f32 1.0, %v759_v47 }
 0x145   :  { %v471_v50 = vsub.f32 1.0, %v761_v48 }
 0x146   :  { %v474_v53 = vmul.f32 %v472_v49, %v1096_v61 }
 0x147   :  { %v473_v56 = vmul.f32 %v471_v50, %v1089_v60 }
 0x20b   :  { %v607_v45 = vpop.f32.mrb[0].mxu1 }
 0x20c   :  { %762 = vtanh.f32 %v607_v45  ;;  %v458_v46 = vpop.f32.mrb[1].mxu1 }
 0x20d   :  { %764 = vtanh.f32 %v458_v46 }
 0x216   :  { %v763_v51 = vpop.eup %762 }
 0x217   :  { %v765_v52 = vpop.eup %764  ;;  %v476_v54 = vmul.f32 %v763_v51, %v759_v47 }
 0x218   :  { %v475_v55 = vmul.f32 %v765_v52, %v761_v48 }
 0x219   :  { %v478_v57 = vadd.f32 %v476_v54, %v474_v53 }
 0x21a   :  { %v477_v58 = vadd.f32 %v475_v55, %v473_v56 }
 0x21b   :  { %480 = vst [vmem:[#allocation2 + $0x8] sm:$0xff] %v478_v57 }
 0x21c   :  { %479 = vst [vmem:[#allocation2] sm:$0xff] %v477_v58 }
 0x21d   :  { %777 = shalt.err (!%p774_p4)
}
 0x21e   :  { %s778_s23 = scalar_lea.hbm %s1172_s6, 256 }
 0x21f   :  { %p779_p5 = scmp.ne.s32.totalorder %s1172_s6, %s778_s23  ;;  %p782_p6 = scmp.lt.u32.totalorder %s778_s23, %s1172_s6 }
 0x221   :  { %p784_p7 = pnand %p782_p6, %p779_p5 }
 0x223   :  { %787 = shalt.err (!%p784_p7)
}
 0x224   :  { %s792_s28 = smov 128   ;;  %s793_s29 = smov 8  }
 0x225   :  { %492 = dma.vmem_to_hbm [thread:$0]  %s487_s2, 256, %s1172_s6, [#allocation3], %s792_s28, %s792_s28, %s793_s29  }
 0x226   :  { %788 = dma.done.wait [#allocation3], 256  }
 0x227   :  { %789 = vsyncadd [#allocation3], 4294967040 }
 0x228   :  { %496 = vsyncpa [#allocation3], 1 }

</bundles_post_ra>
